<compile_context>
chip_gen: v7x
topology: tpu7x:2x2x1
jax: 0.10.0
libtpu: 0.0.40
codegen_flags: <defaults>
</compile_context>

<pallas_src>
import functools

import jax
import jax.numpy as jnp
from jax.experimental import pallas as pl
from jax.experimental.pallas import tpu as pltpu


def _attention_avg_kernel(*refs, has_mask):
    if has_mask:
        states_ref, context_ref, mask_ref, out_ref, m_sc, l_sc, acc_sc = refs
    else:
        states_ref, context_ref, out_ref, m_sc, l_sc, acc_sc = refs
        mask_ref = None

    t = pl.program_id(1)

    @pl.when(t == 0)
    def _():
        m_sc[...] = jnp.full_like(m_sc, -jnp.inf)
        l_sc[...] = jnp.zeros_like(l_sc)
        acc_sc[...] = jnp.zeros_like(acc_sc)

    s = states_ref[...]                          # (TB, TT, D)  native dtype
    q = context_ref[...]                         # (TB, 1, D)   native dtype

    # Dot-product attention score on the MXU: (TB, 1, TT), f32 accumulate.
    scores = jnp.einsum("bqd,bkd->bqk", q, s,
                        preferred_element_type=jnp.float32)

    if has_mask:
        keep = mask_ref[...] != 0                # (TB, 1, TT)
        scores = jnp.where(keep, scores, jnp.float32(-10000.0))

    # Online (flash-style) softmax accumulation across the T grid axis.
    m_prev = m_sc[...]                                           # (TB, 1, 1)
    m_new = jnp.maximum(m_prev, jnp.max(scores, axis=-1, keepdims=True))
    alpha = jnp.exp(m_prev - m_new)                              # (TB, 1, 1)
    p = jnp.exp(scores - m_new)                                  # (TB, 1, TT)
    l_sc[...] = alpha * l_sc[...] + jnp.sum(p, axis=-1, keepdims=True)
    # Weighted partial sum on the MXU: (TB, 1, D), f32 accumulate.
    acc_sc[...] = alpha * acc_sc[...] + jnp.einsum(
        "bqk,bkd->bqd", p.astype(s.dtype), s,
        preferred_element_type=jnp.float32)
    m_sc[...] = m_new

    @pl.when(t == pl.num_programs(1) - 1)
    def _():
        # Exact normalization: TB divides + one broadcast multiply.
        inv = 1.0 / l_sc[...]
        out_ref[...] = (acc_sc[...] * inv).astype(out_ref.dtype)


def _cdiv(a, b):
    return -(-a // b)


def _vmem_budget_bytes():
    """(double-buffered working-set budget, scoped-VMEM limit) per chip gen."""
    phys = 64 << 20                                   # conservative default (v7x)
    try:
        phys = int(pltpu.get_tpu_info().vmem_capacity_bytes)
    except Exception:
        pass
    budget = min(phys // 2, 32 << 20)                 # working set target
    vmem_limit = min(phys * 3 // 4, 96 << 20)         # raise the scoped default
    vmem_limit = max(vmem_limit, budget + (8 << 20))  # compiler headroom
    return budget, vmem_limit


def _select_tiles(B, T, D, itemsize, has_mask, budget):
    """Pick (batch_tile, seq_tile) so the double-buffered tiles fit VMEM."""
    mask_item = 1 if has_mask else 0

    def working_bytes(tb, tt):
        ins = tb * tt * D * itemsize + tb * D * itemsize + tb * tt * mask_item
        outs = tb * D * itemsize
        scratch = tb * (D + 2) * 4
        return 2 * (ins + outs) + scratch

    # Full T first (single softmax pass); otherwise lane-aligned divisors of T
    # (mask / scores tiles need a last dim that's a multiple of 128).
    tt_candidates = [T] + [tt for tt in (4096, 2048, 1024, 512, 256, 128)
                           if tt < T and T % tt == 0]
    for tt in tt_candidates:
        tb = B
        while tb > 1 and working_bytes(tb, tt) > budget:
            tb = _cdiv(tb, 2)
        if working_bytes(tb, tt) > budget:
            continue
        if B >= 32:
            # >= 4 batch tiles: megacore sharding (v7x) + DMA/compute overlap.
            tb = min(tb, max(8, _cdiv(B, 4)))
        return tb, tt
    return 1, tt_candidates[-1]


def attention_avg(states, context, mask=None, *, batch_tile=None, seq_tile=None):
    """JAX/Pallas equivalent of AttentionAvg.forward with a dot-product score.

    states : (B, T, D); context: (B, D); mask: optional (B, T) boolean.
    returns: (B, D)
    """
    B, T, D = states.shape
    assert context.shape == (B, D), context.shape
    out_dtype = states.dtype
    has_mask = mask is not None

    # Keep operands in the states dtype so both MXU contractions take the
    # native (e.g. bf16) path with f32 accumulation.
    context3 = context.astype(states.dtype).reshape(B, 1, D)
    operands = [states, context3]
    if has_mask:
        assert mask.shape == (B, T), mask.shape
        operands.append((mask != 0).astype(jnp.int8).reshape(B, 1, T))

    itemsize = jnp.dtype(states.dtype).itemsize
    budget, vmem_limit = _vmem_budget_bytes()
    TB, TT = _select_tiles(B, T, D, itemsize, has_mask, budget)
    if batch_tile is not None:
        TB = min(int(batch_tile), B)
    if seq_tile is not None:
        TT = int(seq_tile)
    assert T % TT == 0 and (TT == T or TT % 128 == 0), (T, TT)

    grid = (_cdiv(B, TB), T // TT)

    in_specs = [
        pl.BlockSpec((TB, TT, D), lambda i, t: (i, t, 0)),   # states tile
        pl.BlockSpec((TB, 1, D), lambda i, t: (i, 0, 0)),    # context tile
    ]
    if has_mask:
        in_specs.append(pl.BlockSpec((TB, 1, TT), lambda i, t: (i, 0, t)))

    # TODO(synk): if production D is < 128, pad/fold the feature dim so the
    #             output last dim is lane-dense (avoids masked partial stores).
    out_specs = pl.BlockSpec((TB, 1, D), lambda i, t: (i, 0, 0))

    kernel = functools.partial(_attention_avg_kernel, has_mask=has_mask)

    cost = pl.CostEstimate(
        flops=4 * B * T * D,                    # two contractions, 2 flop/elem
        transcendentals=B * T,                  # exp
        bytes_accessed=(B * T * D * itemsize + B * D * itemsize
                        + (B * T if has_mask else 0) + B * D * itemsize),
    )

    out3 = pl.pallas_call(
        kernel,
        out_shape=jax.ShapeDtypeStruct((B, 1, D), out_dtype),
        grid=grid,
        in_specs=in_specs,
        out_specs=out_specs,
        scratch_shapes=[
            pltpu.VMEM((TB, 1, 1), jnp.float32),   # running max
            pltpu.VMEM((TB, 1, 1), jnp.float32),   # running denominator
            pltpu.VMEM((TB, 1, D), jnp.float32),   # running weighted sum
        ],
        compiler_params=pltpu.CompilerParams(
            dimension_semantics=("parallel", "arbitrary"),
            vmem_limit_bytes=vmem_limit,
        ),
        cost_estimate=cost,
    )(*operands)
    return out3.reshape(B, D)


def _reference(states, context, mask=None):
    scores = jnp.einsum("btd,bd->bt", states, context, precision="highest")
    if mask is not None:
        scores = jnp.where(mask, scores, -10000.0)
    weights = jax.nn.softmax(scores, axis=1)
    return jnp.einsum("bt,btd->bd", weights, states, precision="highest")


if __name__ == "__main__":
    key = jax.random.PRNGKey(0)
    k1, k2, k3 = jax.random.split(key, 3)

    B, T, D = 2, 8, 32
    states = jax.random.normal(k1, (B, T, D), dtype=jnp.float32)
    context = jax.random.normal(k2, (B, D), dtype=jnp.float32)
    mask = jax.random.uniform(k3, (B, T)) > 0.3
    mask = mask.at[:, 0].set(True)          # at least one valid position per row

    # Masked path.
    out_m = jax.block_until_ready(attention_avg(states, context, mask))
    ref_m = _reference(states, context, mask)
    assert out_m.shape == (B, D), out_m.shape
    assert out_m.dtype == ref_m.dtype
    assert jnp.allclose(out_m, ref_m, rtol=1e-4, atol=1e-4), "mismatch (masked)"

    # mask=None path (mask input skipped entirely).
    out_u = jax.block_until_ready(attention_avg(states, context, None))
    ref_u = _reference(states, context, None)
    assert jnp.allclose(out_u, ref_u, rtol=1e-4, atol=1e-4), "mismatch (no mask)"

    # Exercise the tiled / online-softmax path (batch grid x seq grid).
    B2, T2, D2 = 16, 256, 128
    kk1, kk2, kk3 = jax.random.split(jax.random.PRNGKey(1), 3)
    states2 = jax.random.normal(kk1, (B2, T2, D2), dtype=jnp.float32)
    context2 = jax.random.normal(kk2, (B2, D2), dtype=jnp.float32)
    mask2 = jax.random.uniform(kk3, (B2, T2)) > 0.5
    mask2 = mask2.at[:, 0].set(True)
    out_t = jax.block_until_ready(
        attention_avg(states2, context2, mask2, batch_tile=8, seq_tile=128))
    ref_t = _reference(states2, context2, mask2)
    assert jnp.allclose(out_t, ref_t, rtol=1e-4, atol=1e-4), "mismatch (tiled)"

    print("KERNEL_OK")
</pallas_src>

<mosaic_0001>
module attributes {stable_mosaic.version = 11 : i64} {
  func.func @_attention_avg_kernel(%arg0: i32, %arg1: i32, %arg2: memref<2x8x32xf32, #tpu.memory_space<vmem>>, %arg3: memref<2x1x32xf32, #tpu.memory_space<vmem>>, %arg4: memref<2x1x8xi8, #tpu.memory_space<vmem>>, %arg5: memref<2x1x32xf32, #tpu.memory_space<vmem>>, %arg6: memref<2x1x1xf32, #tpu.memory_space<vmem>>, %arg7: memref<2x1x1xf32, #tpu.memory_space<vmem>>, %arg8: memref<2x1x32xf32, #tpu.memory_space<vmem>>) attributes {dimension_semantics = [#tpu.dimension_semantics<parallel>, #tpu.dimension_semantics<arbitrary>], iteration_bounds = array<i64: 1, 1>, scalar_prefetch = 0 : i64, scratch_operands = 3 : i64, tpu.core_type = #tpu.core_type<tc>, window_params = [{transform_indices = @transform_0, window_bounds = array<i64: 2, 8, 32>}, {transform_indices = @transform_1, window_bounds = array<i64: 2, 1, 32>}, {transform_indices = @transform_2, window_bounds = array<i64: 2, 1, 8>}, {transform_indices = @transform_3, window_bounds = array<i64: 2, 1, 32>}]} {
    %c0_i32 = arith.constant 0 : i32
    %0 = arith.cmpi eq, %arg1, %c0_i32 : i32
    %1 = arith.extui %0 : i1 to i32
    %c0_i32_0 = arith.constant 0 : i32
    %2 = arith.cmpi ne, %1, %c0_i32_0 : i32
    scf.if %2 {
      %cst_33 = arith.constant 0xFF800000 : f32
      %36 = vector.broadcast %cst_33 : f32 to vector<2x1x1xf32>
      %c0_34 = arith.constant 0 : index
      %c0_35 = arith.constant 0 : index
      %c0_36 = arith.constant 0 : index
      %37 = vector.load %arg6[%c0_34, %c0_35, %c0_36] : memref<2x1x1xf32, #tpu.memory_space<vmem>>, vector<2x1x1xf32>
      tpu.vector_store %arg6[%c0_34, %c0_35, %c0_36], %36 {strides = array<i32>} : memref<2x1x1xf32, #tpu.memory_space<vmem>>, vector<2x1x1xf32>,
      %cst_37 = arith.constant 0.000000e+00 : f32
      %38 = vector.broadcast %cst_37 : f32 to vector<2x1x1xf32>
      %c0_38 = arith.constant 0 : index
      %c0_39 = arith.constant 0 : index
      %c0_40 = arith.constant 0 : index
      %39 = vector.load %arg7[%c0_38, %c0_39, %c0_40] : memref<2x1x1xf32, #tpu.memory_space<vmem>>, vector<2x1x1xf32>
      tpu.vector_store %arg7[%c0_38, %c0_39, %c0_40], %38 {strides = array<i32>} : memref<2x1x1xf32, #tpu.memory_space<vmem>>, vector<2x1x1xf32>,
      %cst_41 = arith.constant 0.000000e+00 : f32
      %40 = vector.broadcast %cst_41 : f32 to vector<2x1x32xf32>
      %c0_42 = arith.constant 0 : index
      %c0_43 = arith.constant 0 : index
      %c0_44 = arith.constant 0 : index
      %41 = vector.load %arg8[%c0_42, %c0_43, %c0_44] : memref<2x1x32xf32, #tpu.memory_space<vmem>>, vector<2x1x32xf32>
      tpu.vector_store %arg8[%c0_42, %c0_43, %c0_44], %40 {strides = array<i32>} : memref<2x1x32xf32, #tpu.memory_space<vmem>>, vector<2x1x32xf32>,
    } else {
    }
    %c0 = arith.constant 0 : index
    %c0_1 = arith.constant 0 : index
    %c0_2 = arith.constant 0 : index
    %3 = vector.load %arg2[%c0, %c0_1, %c0_2] : memref<2x8x32xf32, #tpu.memory_space<vmem>>, vector<2x8x32xf32>
    %c0_3 = arith.constant 0 : index
    %c0_4 = arith.constant 0 : index
    %c0_5 = arith.constant 0 : index
    %4 = vector.load %arg3[%c0_3, %c0_4, %c0_5] : memref<2x1x32xf32, #tpu.memory_space<vmem>>, vector<2x1x32xf32>
    "tpu.trace_start"() <{level = 10 : i32, message = "bqd,bkd->bqk"}> : () -> ()
    %cst = arith.constant dense<0.000000e+00> : vector<2x1x8xf32>
    %5 = tpu.matmul %4, %3, %cst {dimension_numbers = #tpu.dot_dimension_numbers<[2], [2], [1], [1], [0, 0, 0, 1, 1, 1], [0], [0]>} : vector<2x1x32xf32>, vector<2x8x32xf32>, vector<2x1x8xf32> -> vector<2x1x8xf32>
    "tpu.trace_stop"() : () -> ()
    %c0_6 = arith.constant 0 : index
    %c0_7 = arith.constant 0 : index
    %c0_8 = arith.constant 0 : index
    %6 = vector.load %arg4[%c0_6, %c0_7, %c0_8] : memref<2x1x8xi8, #tpu.memory_space<vmem>>, vector<2x1x8xi8>
    %c0_i8 = arith.constant 0 : i8
    %7 = vector.broadcast %c0_i8 : i8 to vector<2x1x8xi8>
    %8 = arith.cmpi ne, %6, %7 : vector<2x1x8xi8>
    %cst_9 = arith.constant -1.000000e+04 : f32
    %9 = vector.broadcast %cst_9 : f32 to vector<2x1x8xf32>
    %10 = arith.select %8, %5, %9 : vector<2x1x8xi1>, vector<2x1x8xf32>
    %c0_10 = arith.constant 0 : index
    %c0_11 = arith.constant 0 : index
    %c0_12 = arith.constant 0 : index
    %11 = vector.load %arg6[%c0_10, %c0_11, %c0_12] : memref<2x1x1xf32, #tpu.memory_space<vmem>>, vector<2x1x1xf32>
    %cst_13 = arith.constant dense<0xFF800000> : vector<2x1xf32>
    %12 = vector.multi_reduction <maximumf>, %10, %cst_13 [2] : vector<2x1x8xf32> to vector<2x1xf32>
    %13 = vector.shape_cast %12 : vector<2x1xf32> to vector<2x1x1xf32>
    %14 = arith.maximumf %11, %13 : vector<2x1x1xf32>
    %15 = arith.subf %11, %14 : vector<2x1x1xf32>
    %16 = math.exp %15 : vector<2x1x1xf32>
    %17 = vector.broadcast %14 : vector<2x1x1xf32> to vector<2x1x8xf32>
    %18 = arith.subf %10, %17 : vector<2x1x8xf32>
    %19 = math.exp %18 : vector<2x1x8xf32>
    %c0_14 = arith.constant 0 : index
    %c0_15 = arith.constant 0 : index
    %c0_16 = arith.constant 0 : index
    %20 = vector.load %arg7[%c0_14, %c0_15, %c0_16] : memref<2x1x1xf32, #tpu.memory_space<vmem>>, vector<2x1x1xf32>
    %21 = arith.mulf %16, %20 : vector<2x1x1xf32>
    %cst_17 = arith.constant dense<0.000000e+00> : vector<2x1xf32>
    %22 = vector.multi_reduction <add>, %19, %cst_17 [2] : vector<2x1x8xf32> to vector<2x1xf32>
    %23 = vector.shape_cast %22 : vector<2x1xf32> to vector<2x1x1xf32>
    %24 = arith.addf %21, %23 : vector<2x1x1xf32>
    %c0_18 = arith.constant 0 : index
    %c0_19 = arith.constant 0 : index
    %c0_20 = arith.constant 0 : index
    %25 = vector.load %arg7[%c0_18, %c0_19, %c0_20] : memref<2x1x1xf32, #tpu.memory_space<vmem>>, vector<2x1x1xf32>
    tpu.vector_store %arg7[%c0_18, %c0_19, %c0_20], %24 {strides = array<i32>} : memref<2x1x1xf32, #tpu.memory_space<vmem>>, vector<2x1x1xf32>,
    %c0_21 = arith.constant 0 : index
    %c0_22 = arith.constant 0 : index
    %c0_23 = arith.constant 0 : index
    %26 = vector.load %arg8[%c0_21, %c0_22, %c0_23] : memref<2x1x32xf32, #tpu.memory_space<vmem>>, vector<2x1x32xf32>
    %27 = vector.broadcast %16 : vector<2x1x1xf32> to vector<2x1x32xf32>
    %28 = arith.mulf %27, %26 : vector<2x1x32xf32>
    "tpu.trace_start"() <{level = 10 : i32, message = "bqk,bkd->bqd"}> : () -> ()
    %cst_24 = arith.constant dense<0.000000e+00> : vector<2x1x32xf32>
    %29 = tpu.matmul %19, %3, %cst_24 {dimension_numbers = #tpu.dot_dimension_numbers<[2], [1], [1], [2], [0, 0, 0, 1, 1, 2], [0], [0]>} : vector<2x1x8xf32>, vector<2x8x32xf32>, vector<2x1x32xf32> -> vector<2x1x32xf32>
    "tpu.trace_stop"() : () -> ()
    %30 = arith.addf %28, %29 : vector<2x1x32xf32>
    %c0_25 = arith.constant 0 : index
    %c0_26 = arith.constant 0 : index
    %c0_27 = arith.constant 0 : index
    %31 = vector.load %arg8[%c0_25, %c0_26, %c0_27] : memref<2x1x32xf32, #tpu.memory_space<vmem>>, vector<2x1x32xf32>
    tpu.vector_store %arg8[%c0_25, %c0_26, %c0_27], %30 {strides = array<i32>} : memref<2x1x32xf32, #tpu.memory_space<vmem>>, vector<2x1x32xf32>,
    %c0_28 = arith.constant 0 : index
    %c0_29 = arith.constant 0 : index
    %c0_30 = arith.constant 0 : index
    %32 = vector.load %arg6[%c0_28, %c0_29, %c0_30] : memref<2x1x1xf32, #tpu.memory_space<vmem>>, vector<2x1x1xf32>
    tpu.vector_store %arg6[%c0_28, %c0_29, %c0_30], %14 {strides = array<i32>} : memref<2x1x1xf32, #tpu.memory_space<vmem>>, vector<2x1x1xf32>,
    %c0_i32_31 = arith.constant 0 : i32
    %33 = arith.cmpi eq, %arg1, %c0_i32_31 : i32
    %34 = arith.extui %33 : i1 to i32
    %c0_i32_32 = arith.constant 0 : i32
    %35 = arith.cmpi ne, %34, %c0_i32_32 : i32
    scf.if %35 {
      %c0_33 = arith.constant 0 : index
      %c0_34 = arith.constant 0 : index
      %c0_35 = arith.constant 0 : index
      %36 = vector.load %arg7[%c0_33, %c0_34, %c0_35] : memref<2x1x1xf32, #tpu.memory_space<vmem>>, vector<2x1x1xf32>
      %cst_36 = arith.constant 1.000000e+00 : f32
      %37 = vector.broadcast %cst_36 : f32 to vector<2x1x1xf32>
      %38 = arith.divf %37, %36 : vector<2x1x1xf32>
      %c0_37 = arith.constant 0 : index
      %c0_38 = arith.constant 0 : index
      %c0_39 = arith.constant 0 : index
      %39 = vector.load %arg8[%c0_37, %c0_38, %c0_39] : memref<2x1x32xf32, #tpu.memory_space<vmem>>, vector<2x1x32xf32>
      %40 = vector.broadcast %38 : vector<2x1x1xf32> to vector<2x1x32xf32>
      %41 = arith.mulf %39, %40 : vector<2x1x32xf32>
      %c0_40 = arith.constant 0 : index
      %c0_41 = arith.constant 0 : index
      %c0_42 = arith.constant 0 : index
      %42 = vector.load %arg5[%c0_40, %c0_41, %c0_42] : memref<2x1x32xf32, #tpu.memory_space<vmem>>, vector<2x1x32xf32>
      tpu.vector_store %arg5[%c0_40, %c0_41, %c0_42], %41 {strides = array<i32>} : memref<2x1x32xf32, #tpu.memory_space<vmem>>, vector<2x1x32xf32>,
    } else {
    }
    return
  }
  func.func @transform_0(%arg0: i32, %arg1: i32) -> (i32, i32, i32) {
    %c0_i32 = arith.constant 0 : i32
    %c0_i32_0 = arith.constant 0 : i32
    return %arg0, %arg1, %c0_i32 : i32, i32, i32
  }
  func.func @transform_1(%arg0: i32, %arg1: i32) -> (i32, i32, i32) {
    %c0_i32 = arith.constant 0 : i32
    %c0_i32_0 = arith.constant 0 : i32
    %c0_i32_1 = arith.constant 0 : i32
    return %arg0, %c0_i32, %c0_i32_0 : i32, i32, i32
  }
  func.func @transform_2(%arg0: i32, %arg1: i32) -> (i32, i32, i32) {
    %c0_i32 = arith.constant 0 : i32
    %c0_i32_0 = arith.constant 0 : i32
    return %arg0, %c0_i32, %arg1 : i32, i32, i32
  }
  func.func @transform_3(%arg0: i32, %arg1: i32) -> (i32, i32, i32) {
    %c0_i32 = arith.constant 0 : i32
    %c0_i32_0 = arith.constant 0 : i32
    %c0_i32_1 = arith.constant 0 : i32
    return %arg0, %c0_i32, %c0_i32_0 : i32, i32, i32
  }
}

</mosaic_0001>

<bundles_post_ra>
// kernel: tpu_custom_call.1
= control target key start
LH: loop header
LB: loop body
LE: loop exit
PB: predicated region body
PF: predicated region fallthrough
CT: control target
= control target key end

     0   :  { %8 = vsyncpa [#allocation6], 0  ;;  %s708_s0 = inlined_call_operand.hbm [shape: f32[2,8,32], index: 0, kind: input, shape index: {}]   ;;  %s709_s1 = inlined_call_operand.vmem [shape: f32[2,1,32], index: 1, kind: input, shape index: {}]   ;;  %s710_s2 = inlined_call_operand.vmem [shape: s8[2,1,8], index: 2, kind: input, shape index: {}]   ;;  %s711_s3 = inlined_call_operand.hbm [shape: f32[2,1,32], index: 3, kind: output, shape index: {}]  }
   0x1   :  { %9 = vsyncpa [#allocation7], 0  ;;  %s600_s12 = smov [#allocation5]   ;;  %s552_s16 = scalar_lea.hbm %s708_s0, 256 }
   0x2   :  { %s15_s13 = sshll.u32 %s600_s12, 4  ;;  %p553_p0 = scmp.ne.s32.totalorder %s708_s0, %s552_s16  ;;  %s16_s13 = int_to_ptr.vmem [resolvable:$true] %s15_s13 }
   0x3   :  { %p556_p1 = scmp.lt.u32.totalorder %s552_s16, %s708_s0 }
   0x5   :  { %p558_p2 = pnand %p556_p1, %p553_p0 }
   0x7   :  { %561 = shalt.err (!%p558_p2)
}
   0x8   :  { %s562_s21 = scalar_lea.vmem %s16_s13, 256  ;;  %p567_p4 = scmp.lt.s32.totalorder %s16_s13, %s16_s13 }
   0x9   :  { %p563_p3 = scmp.ne.s32.totalorder %s16_s13, %s562_s21  ;;  %p568_p5 = scmp.lt.s32.totalorder %s562_s21, %s562_s21 }
   0xb   :  { %p569_p6 = por %p568_p5, %p567_p4 }
   0xd   :  { %p570_p7 = pnand %p569_p6, %p563_p3 }
   0xf   :  { %573 = shalt.err (!%p570_p7)
}
  0x10   :  { %s601_s22 = smov 128   ;;  %s602_s23 = smov 8  }
  0x11   :  { %21 = dma.hbm_to_vmem [thread:$0]  %s708_s0, 256, %s16_s13, [#allocation6], %s601_s22, %s601_s22, %s602_s23  }
  0x12   :  { %596 = dma.done.wait [#allocation6], 256  }
  0x13   :  { %597 = vsyncadd [#allocation6], 4294967040  ;;  %v603_v0 = vmov 0.0   ;;  %vm604_vm0 = vmmov 0   ;;  %vm47_vm1 = vcmask 261120   ;;  %v43_v1 = vld [vmem:[#allocation5] sm:$0xff]  ;;  %v234_v29 = vlaneseq }
  0x14   :  { %508 = vmatprep.subr.mxu0 %v603_v0  ;;  %510 = vmatprep.mubr.msk.f32.mxu0 %vm604_vm0, %v603_v0  ;;  %v44_v2 = vld [vmem:[#allocation5 + $0x8] sm:$0xff]  ;;  %v45_v3 = vld [vmem:[%s709_s1] sm:$0x1]  ;;  %v46_v4 = vld [vmem:[%s709_s1 + $0x1] sm:$0x1]  ;;  %v605_v5 = vmov 0  }
  0x15   :  { %513 = vmatprep.subr.mxu1 %v603_v0  ;;  %515 = vmatprep.mubr.msk.f32.mxu1 %vm604_vm0, %v603_v0  ;;  %vm35_vm2 = vcmask 0   ;;  %v606_v6 = vmov -inf   ;;  %v200_v7 = vld [vmem:[%s710_s2] sm:$0x1]  ;;  %v201_v8 = vld [vmem:[%s710_s2 + $0x1] sm:$0x1] }
  0x16   :  { %509 = vmatpush3.xpose.msk.msra.mxu0 %vm47_vm1, %v43_v1  ;;  %514 = vmatpush3.xpose.msk.msra.mxu1 %vm47_vm1, %v44_v2  ;;  %36 = vst.msk [vmem:[#allocation2] sm:$0x1] %vm35_vm2, %v606_v6  ;;  %37 = vst.msk [vmem:[#allocation2 + $0x1] sm:$0x1] %vm35_vm2, %v606_v6  ;;  %vm202_vm3 = vnez %v200_v7  ;;  %vm203_vm4 = vnez %v201_v8  ;;  %vm214_vm7 = vcmask 57344   ;;  %v235_v30 = vshrl.u32 %v234_v29, 7 }
  0x17   :  { %518 = vmatprep.subr.mxu0 %v603_v0  ;;  %523 = vmatprep.subr.mxu1 %v603_v0  ;;  %38 = vst.msk [vmem:[#allocation3] sm:$0x1] %vm35_vm2, %v603_v0  ;;  %39 = vst.msk [vmem:[#allocation3 + $0x1] sm:$0x1] %vm35_vm2, %v603_v0  ;;  %v204_v9 = vsel %vm202_vm3, 16843009, %v605_v5 }
  0x18   :  { %538 = vset.pattern.permute.xlu1 %v605_v5  ;;  %539 = vset.pattern.permute.xlu0 %v605_v5  ;;  %v205_v10 = vsel %vm203_vm4, 16843009, %v605_v5  ;;  %v206_v11 = vunpack.c.0.s8 %v204_v9  ;;  %v676_v31 = vsub.s32 0, %v235_v30  ;;  %vm290_vm8 = vcmask 64512   ;;  %s607_s2 = smov [#allocation8]  }
  0x19   :  { %511 = vmatmul.mubr.msk.f32.vlgmr.msra.gmra.mrb[0].mxu0 %vm47_vm1, %v45_v3  ;;  %516 = vmatmul.mubr.msk.f32.vlgmr.msra.gmra.mrb[0].mxu1 %vm47_vm1, %v46_v4  ;;  %v207_v12 = vunpack.c.0.s8 %v205_v10  ;;  %vm40_vm9 = vcmask 253952   ;;  %s482_s5 = sshll.u32 %s607_s2, 4  ;;  %s483_s5 = int_to_ptr.vmem [resolvable:$true] %s482_s5 }
  0x1a   :  { %519 = vmatpush3.msra.mxu0 %v43_v1  ;;  %520 = vmatprep.mubr.msk.f32.mxu0 %vm604_vm0, %v603_v0  ;;  %vm208_vm5 = vcmp.ne.s32.totalorder %v206_v11, 0  ;;  %41 = vst.msk [vmem:[#allocation4] sm:$0x1] %vm40_vm9, %v603_v0  ;;  %42 = vst.msk [vmem:[#allocation4 + $0x1] sm:$0x1] %vm40_vm9, %v603_v0  ;;  %s574_s6 = scalar_lea.vmem %s483_s5, 32  ;;  %p579_p9 = scmp.lt.s32.totalorder %s483_s5, %s483_s5 }
  0x1b   :  { %524 = vmatpush3.msra.mxu1 %v44_v2  ;;  %525 = vmatprep.mubr.msk.f32.mxu1 %vm604_vm0, %v603_v0  ;;  %vm209_vm6 = vcmp.ne.s32.totalorder %v207_v12, 0  ;;  %p575_p8 = scmp.ne.s32.totalorder %s483_s5, %s574_s6  ;;  %p580_p10 = scmp.lt.s32.totalorder %s574_s6, %s574_s6 }
  0x1d   :  { %v212_v21 = vld [vmem:[#allocation2] sm:$0x1]  ;;  %v213_v24 = vld [vmem:[#allocation2 + $0x1] sm:$0x1]  ;;  %p581_p11 = por %p580_p10, %p579_p9 }
  0x1e   :  { %v253_v48 = vld [vmem:[#allocation3] sm:$0x1]  ;;  %v254_v51 = vld [vmem:[#allocation3 + $0x1] sm:$0x1] }
  0x1f   :  { %p582_p12 = pnand %p581_p11, %p575_p8 }
  0x21   :  { %v268_v63 = vld [vmem:[#allocation4] sm:$0x1]  ;;  %v269_v3 = vld [vmem:[#allocation4 + $0x1] sm:$0x1] }
  0xec   :  { %v120_v13 = vpop.f32.mrb[0].mxu0  ;;  %v196_v14 = vpop.f32.mrb[0].mxu1 }
  0xed   :  { %v210_v15 = vsel %vm208_vm5, %v120_v13, -10000.0  ;;  %v512_v16 = vpop.f32.mrb[1].mxu0  ;;  %v211_v17 = vsel %vm209_vm6, %v196_v14, -10000.0  ;;  %v517_v18 = vpop.f32.mrb[1].mxu1 }
  0xee   :  { %v215_v19 = vsel %vm214_vm7, %v210_v15, -inf  ;;  %v218_v20 = vsel %vm214_vm7, %v211_v17, -inf }
  0xef   :  { %216 = vmax.xlane.f32.xlu0 %v215_v19 }
  0xf3   :  { %219 = vmax.xlane.f32.xlu0 %v218_v20 }
 0x17c   :  { %v217_v22 = vpop.xlane.xlu0 %216 }
 0x17d   :  { %v221_v23 = vmax.f32 %v212_v21, %v217_v22 }
 0x17f   :  { %v223_v25 = vsub.f32 %v212_v21, %v221_v23  ;;  %442 = vst.msk [vmem:[#allocation2] sm:$0x1] %vm35_vm2, %v221_v23  ;;  %231 = vperm.xlu1 %538, %v221_v23  }
 0x180   :  { %v220_v26 = vpop.xlane.xlu0 %219 }
 0x181   :  { %v222_v27 = vmax.f32 %v213_v24, %v220_v26  ;;  %v225_v45 = vmul.f32 1.442695, %v223_v25 }
 0x183   :  { %v224_v28 = vsub.f32 %v213_v24, %v222_v27  ;;  %443 = vst.msk [vmem:[#allocation2 + $0x1] sm:$0x1] %vm35_vm2, %v222_v27  ;;  %240 = vperm.xlu1 %538, %v222_v27  }
 0x185   :  { %v227_v44 = vmul.f32 1.442695, %v224_v28 }
 0x1fe   :  { %v232_v32 = vpop.permute.xlu1 %231 }
 0x1ff   :  { %v237_v33 = vrot.slane %v232_v32, %v676_v31 }
 0x201   :  { %v247_v34 = vsub.f32 %v210_v15, %v237_v33 }
 0x202   :  { %v241_v35 = vpop.permute.xlu1 %240 }
 0x203   :  { %v249_v36 = vmul.f32 1.442695, %v247_v34  ;;  %v246_v37 = vrot.slane %v241_v35, %v676_v31 }
 0x205   :  { %540 = vpow2.f32 %v249_v36  ;;  %v248_v38 = vsub.f32 %v211_v17, %v246_v37 }
 0x207   :  { %v251_v39 = vmul.f32 1.442695, %v248_v38 }
 0x209   :  { %542 = vpow2.f32 %v251_v39 }
 0x20a   :  { %544 = vpow2.f32 %v227_v44 }
 0x20b   :  { %546 = vpow2.f32 %v225_v45 }
 0x20f   :  { %v541_v40 = vpop.eup %540 }
 0x210   :  { %521 = vmatmul.mubr.msk.f32.vlgmr.msra.gmra.mrb[2].mxu0 %vm290_vm8, %v541_v40  ;;  %v257_v41 = vsel %vm214_vm7, %v541_v40, 0.0 }
 0x211   :  { %258 = vadd.xlane.f32.xlu0 %v257_v41 }
 0x213   :  { %v543_v42 = vpop.eup %542 }
 0x214   :  { %526 = vmatmul.mubr.msk.f32.vlgmr.msra.gmra.mrb[2].mxu1 %vm290_vm8, %v543_v42  ;;  %v260_v43 = vsel %vm214_vm7, %v543_v42, 0.0  ;;  %v545_v46 = vpop.eup %544 }
 0x215   :  { %261 = vadd.xlane.f32.xlu1 %v260_v43  ;;  %v547_v47 = vpop.eup %546  ;;  %v256_v53 = vmul.f32 %v545_v46, %v254_v51 }
 0x216   :  { %v255_v49 = vmul.f32 %v547_v47, %v253_v48 }
 0x226   :  { %281 = vperm.xlu1 %538, %v545_v46  }
 0x227   :  { %272 = vperm.xlu0 %539, %v547_v47  }
 0x29e   :  { %v259_v50 = vpop.xlane.xlu0 %258 }
 0x29f   :  { %v263_v52 = vadd.f32 %v259_v50, %v255_v49 }
 0x2a1   :  { %266 = vst.msk [vmem:[#allocation3] sm:$0x1] %vm35_vm2, %v263_v52 }
 0x2a2   :  { %v262_v54 = vpop.xlane.xlu1 %261 }
 0x2a3   :  { %v264_v55 = vadd.f32 %v262_v54, %v256_v53 }
 0x2a5   :  { %267 = vst.msk [vmem:[#allocation3 + $0x1] sm:$0x1] %vm35_vm2, %v264_v55 }
 0x2a6   :  { %v273_v60 = vpop.permute.xlu0 %272  ;;  %v282_v62 = vpop.permute.xlu1 %281 }
 0x2a7   :  { %v278_v61 = vrot.slane %v273_v60, %v676_v31  ;;  %v287_v0 = vrot.slane %v282_v62, %v676_v31 }
 0x2a8   :  { %v447_v56 = vld [vmem:[#allocation3] sm:$0x1] }
 0x2a9   :  { %548 = vrcp.f32 %v447_v56  ;;  %v288_v1 = vmul.f32 %v278_v61, %v268_v63  ;;  %v289_v6 = vmul.f32 %v287_v0, %v269_v3 }
 0x2ac   :  { %v448_v57 = vld [vmem:[#allocation3 + $0x1] sm:$0x1] }
 0x2ad   :  { %550 = vrcp.f32 %v448_v57 }
 0x2b3   :  { %v549_v58 = vpop.eup %548 }
 0x2b4   :  { %457 = vperm.xlu0 %539, %v549_v58  }
 0x2b7   :  { %v551_v59 = vpop.eup %550 }
 0x2b8   :  { %466 = vperm.xlu0 %539, %v551_v59  }
 0x2e3   :  { %v360_v2 = vpop.f32.mrb[2].mxu0 }
 0x2e4   :  { %v437_v4 = vadd.f32 %v360_v2, %v288_v1  ;;  %v522_v5 = vpop.f32.mrb[3].mxu0 }
 0x2e6   :  { %440 = vst.msk [vmem:[#allocation4] sm:$0x1] %vm40_vm9, %v437_v4 }
 0x2e7   :  { %v433_v7 = vpop.f32.mrb[2].mxu1 }
 0x2e8   :  { %v438_v8 = vadd.f32 %v433_v7, %v289_v6  ;;  %v527_v9 = vpop.f32.mrb[3].mxu1 }
 0x2ea   :  { %441 = vst.msk [vmem:[#allocation4 + $0x1] sm:$0x1] %vm40_vm9, %v438_v8 }
 0x2ed   :  { %v453_v12 = vld [vmem:[#allocation4] sm:$0x1] }
 0x2f1   :  { %v454_v16 = vld [vmem:[#allocation4 + $0x1] sm:$0x1] }
 0x333   :  { %v458_v10 = vpop.permute.xlu0 %457 }
 0x334   :  { %v463_v11 = vrot.slane %v458_v10, %v676_v31 }
 0x336   :  { %v473_v13 = vmul.f32 %v463_v11, %v453_v12 }
 0x337   :  { %v467_v14 = vpop.permute.xlu0 %466 }
 0x338   :  { %475 = vst.msk [vmem:[#allocation8] sm:$0x1] %vm40_vm9, %v473_v13  ;;  %v472_v15 = vrot.slane %v467_v14, %v676_v31 }
 0x33a   :  { %v474_v17 = vmul.f32 %v472_v15, %v454_v16 }
 0x33c   :  { %476 = vst.msk [vmem:[#allocation8 + $0x1] sm:$0x1] %vm40_vm9, %v474_v17 }
 0x33d   :  { %585 = shalt.err (!%p582_p12)
}
 0x33e   :  { %s586_s9 = scalar_lea.hbm %s711_s3, 32 }
 0x33f   :  { %p587_p13 = scmp.ne.s32.totalorder %s711_s3, %s586_s9  ;;  %p590_p0 = scmp.lt.u32.totalorder %s586_s9, %s711_s3 }
 0x341   :  { %p592_p1 = pnand %p590_p0, %p587_p13 }
 0x343   :  { %595 = shalt.err (!%p592_p1)
}
 0x344   :  { %s608_s14 = smov 16   ;;  %s609_s15 = smov 1  }
 0x345   :  { %488 = dma.vmem_to_hbm [thread:$0]  %s483_s5, 32, %s711_s3, [#allocation7], %s608_s14, %s608_s14, %s609_s15  }
 0x346   :  { %598 = dma.done.wait [#allocation7], 32  }
 0x347   :  { %599 = vsyncadd [#allocation7], 4294967264 }
 0x348   :  { %492 = vsyncpa [#allocation6], 1 }
 0x349   :  { %493 = vsyncpa [#allocation7], 1 }

</bundles_post_ra>
